<compile_context>
chip_gen: v6e
topology: v6e:2x2x1
jax: 0.10.0
libtpu: 0.0.40
codegen_flags: <defaults>
</compile_context>

<pallas_src>
import functools

import jax
import jax.numpy as jnp
from jax import lax
from jax.experimental import pallas as pl
from jax.experimental.pallas import tpu as pltpu

LANE = 128


def _focal_loss_kernel(x_ref, t_ref, out_ref, acc_ref, *,
                       gamma, alpha, num_spatial, tile_k):
    # x_ref : (C, tile_k, 128)  logits for one sample / one spatial tile
    # t_ref : (1, tile_k, 128)  int32 target classes
    # out_ref: (1, 128)         per-sample lane-dense partial sum
    # acc_ref: (tile_k, 128)    f32 running loss accumulator (per core)
    s = pl.program_id(1)

    @pl.when(s == 0)
    def _init():
        acc_ref[...] = jnp.zeros_like(acc_ref)

    x = x_ref[...].astype(jnp.float32)                  # (C, TK, 128)
    t = t_ref[0]                                        # (TK, 128) int32

    # one-hot over the (small) class axis -> pure VPU compares/selects
    cls = lax.broadcasted_iota(jnp.int32, x.shape, 0)   # (C, TK, 128)
    onehot = (cls == t[None, :, :]).astype(jnp.float32)

    # numerically stable log-softmax pieces, reduced over the class axis
    m = jnp.max(x, axis=0)                              # (TK, 128)
    ez = jnp.exp(x - m[None, :, :])                     # (C, TK, 128)
    sum_ez = jnp.sum(ez, axis=0)                        # (TK, 128)
    x_t = jnp.sum(x * onehot, axis=0)                   # target logit
    ez_t = jnp.sum(ez * onehot, axis=0)                 # exp(x_t - m)

    logpt = x_t - m - jnp.log(sum_ez)                   # (TK, 128)
    pt = ez_t / sum_ez                                  # == exp(logpt), no 2nd exp

    if alpha is not None:
        # alpha is a tuple of python floats -> scalar constants, no DMA.
        at = jnp.zeros_like(logpt)
        for c, a_c in enumerate(alpha):
            at = at + jnp.float32(a_c) * (t == c).astype(jnp.float32)
        logpt = logpt * at

    if gamma == 0:
        loss = -logpt                                    # avoid 0**0 / pow NaN
    else:
        if float(gamma).is_integer() and 0 < gamma <= 8:
            omp = 1.0 - pt
            focal = omp
            for _ in range(int(gamma) - 1):
                focal = focal * omp                      # no exp/log on EUP
        else:
            focal = jnp.power(1.0 - pt, jnp.float32(gamma))
        loss = -(focal * logpt)

    # mask spatial padding
    base = s * (tile_k * LANE)
    kk = lax.broadcasted_iota(jnp.int32, loss.shape, 0)
    ll = lax.broadcasted_iota(jnp.int32, loss.shape, 1)
    idx = base + kk * LANE + ll
    loss = jnp.where(idx < num_spatial, loss, 0.0)

    acc_ref[...] += loss                                 # lane-dense VPU add

    @pl.when(s == pl.num_programs(1) - 1)
    def _finalize():
        out_ref[...] = jnp.sum(acc_ref[...], axis=0, keepdims=True)  # (1, 128)


def focal_loss(logits, target, *, gamma=0.0, alpha=None, size_average=True,
               tile_lanes=32768):
    """Pallas FocalLoss forward (matches the PyTorch module's semantics).

    logits: (N, C, *spatial) class dim 1, or (M, C).
    target: integer class indices with the matching non-class dims.
    alpha : None, scalar (-> [a, 1-a]), or per-class list/tuple/array.
    """
    logits = jnp.asarray(logits)
    target = jnp.asarray(target)

    if logits.ndim > 2:
        N, C = logits.shape[0], logits.shape[1]
        x = logits.reshape(N, C, -1)                     # (N, C, S), no transpose
        t = target.reshape(N, 1, -1).astype(jnp.int32)   # (N, 1, S)
    else:
        M, C = logits.shape
        # 2-D case: one cheap transpose to put classes on the leading axis.
        x = logits.T.reshape(1, C, M)
        t = target.reshape(1, 1, -1).astype(jnp.int32)
        N = 1
    S = x.shape[2]
    num_samples = N * S

    # alpha -> static python tuple (PyTorch: scalar a becomes [a, 1-a])
    if isinstance(alpha, (float, int)):
        alpha_t = (float(alpha), 1.0 - float(alpha))
    elif isinstance(alpha, (list, tuple)):
        alpha_t = tuple(float(a) for a in alpha)
    elif alpha is None:
        alpha_t = None
    else:
        alpha_t = tuple(float(a) for a in jnp.asarray(alpha).tolist())

    # Pad the spatial axis to whole (tile_k, 128) blocks.
    K = pl.cdiv(S, LANE)
    max_tile_k = max(1, tile_lanes // LANE)              # default 256 -> 32768 lanes
    tile_k = min(max_tile_k, K)
    K_pad = pl.cdiv(K, tile_k) * tile_k
    S_pad = K_pad * LANE
    if S_pad != S:
        x = jnp.pad(x, ((0, 0), (0, 0), (0, S_pad - S)))
        t = jnp.pad(t, ((0, 0), (0, 0), (0, S_pad - S)))
    x4 = x.reshape(N, C, K_pad, LANE)
    t4 = t.reshape(N, 1, K_pad, LANE)

    grid = (N, K_pad // tile_k)
    kernel = functools.partial(
        _focal_loss_kernel, gamma=float(gamma), alpha=alpha_t,
        num_spatial=S, tile_k=tile_k)

    partials = pl.pallas_call(
        kernel,
        out_shape=jax.ShapeDtypeStruct((N, 1, LANE), jnp.float32),
        grid_spec=pltpu.PrefetchScalarGridSpec(
            num_scalar_prefetch=0,
            grid=grid,
            in_specs=[
                pl.BlockSpec((None, C, tile_k, LANE), lambda n, s: (n, 0, s, 0)),
                pl.BlockSpec((None, 1, tile_k, LANE), lambda n, s: (n, 0, s, 0)),
            ],
            out_specs=pl.BlockSpec((None, 1, LANE), lambda n, s: (n, 0, 0)),
            scratch_shapes=[pltpu.VMEM((tile_k, LANE), jnp.float32)],
        ),
        compiler_params=pltpu.CompilerParams(
            # batch axis parallel (v7x megacore), spatial reduction sequential;
            # accumulator + per-sample output blocks keep this race-free.
            dimension_semantics=("parallel", "arbitrary")),
    )(x4, t4)

    total = jnp.sum(partials)
    if size_average:
        total = total / jnp.float32(num_samples)
    return total


def _focal_loss_ref(logits, target, *, gamma=0.0, alpha=None,
                    size_average=True):
    """Pure-JAX reference mirroring the PyTorch module."""
    if logits.ndim > 2:
        N, C = logits.shape[0], logits.shape[1]
        x = jnp.transpose(logits.reshape(N, C, -1), (0, 2, 1)).reshape(-1, C)
    else:
        x = logits
    t = jnp.asarray(target).reshape(-1)
    logp = jax.nn.log_softmax(x, axis=1)
    logpt = jnp.take_along_axis(logp, t[:, None], axis=1)[:, 0]
    pt = jnp.exp(logpt)
    if alpha is not None:
        if isinstance(alpha, (float, int)):
            a = jnp.array([alpha, 1.0 - alpha], dtype=x.dtype)
        else:
            a = jnp.asarray(alpha, dtype=x.dtype)
        logpt = logpt * a[t]
    loss = -1.0 * (1.0 - pt) ** gamma * logpt
    return loss.mean() if size_average else loss.sum()


if __name__ == "__main__":
    key = jax.random.PRNGKey(0)
    k1, k2 = jax.random.split(key)

    # NCHW logits: batch=2, classes=4, spatial=16x16 ; targets: (2,16,16) ints
    N, C, H, W = 2, 4, 16, 16
    logits = jax.random.normal(k1, (N, C, H, W), dtype=jnp.float32)
    target = jax.random.randint(k2, (N, H, W), 0, C, dtype=jnp.int32)

    gamma = 2.0
    alpha = [0.1, 0.2, 0.3, 0.4]  # per-class alpha (deterministic, in-script)

    out = focal_loss(logits, target, gamma=gamma, alpha=alpha,
                     size_average=True)
    out = jax.block_until_ready(out)

    ref = _focal_loss_ref(logits, target, gamma=gamma, alpha=alpha,
                          size_average=True)
    assert jnp.allclose(out, ref, atol=1e-5, rtol=1e-4), (out, ref)
    print("KERNEL_OK")
</pallas_src>

<mosaic_0001>
module attributes {stable_mosaic.version = 11 : i64} {
  func.func @_focal_loss_kernel(%arg0: i32, %arg1: i32, %arg2: memref<1x4x2x128xf32, #tpu.memory_space<vmem>>, %arg3: memref<1x1x2x128xi32, #tpu.memory_space<vmem>>, %arg4: memref<1x1x128xf32, #tpu.memory_space<vmem>>, %arg5: memref<2x128xf32, #tpu.memory_space<vmem>>) attributes {dimension_semantics = [#tpu.dimension_semantics<parallel>, #tpu.dimension_semantics<arbitrary>], iteration_bounds = array<i64: 2, 1>, scalar_prefetch = 0 : i64, scratch_operands = 1 : i64, tpu.core_type = #tpu.core_type<tc>, window_params = [{transform_indices = @transform_0, window_bounds = array<i64: 1, 4, 2, 128>}, {transform_indices = @transform_1, window_bounds = array<i64: 1, 1, 2, 128>}, {transform_indices = @transform_2, window_bounds = array<i64: 1, 1, 128>}]} {
    %c0_i32 = arith.constant 0 : i32
    %0 = arith.cmpi eq, %arg1, %c0_i32 : i32
    %1 = arith.extui %0 : i1 to i32
    %c0_i32_0 = arith.constant 0 : i32
    %2 = arith.cmpi ne, %1, %c0_i32_0 : i32
    scf.if %2 {
      %cst_27 = arith.constant 0.000000e+00 : f32
      %81 = vector.broadcast %cst_27 : f32 to vector<2x128xf32>
      %c0_28 = arith.constant 0 : index
      %c0_29 = arith.constant 0 : index
      %82 = vector.load %arg5[%c0_28, %c0_29] : memref<2x128xf32, #tpu.memory_space<vmem>>, vector<2x128xf32>
      tpu.vector_store %arg5[%c0_28, %c0_29], %81 {strides = array<i32>} : memref<2x128xf32, #tpu.memory_space<vmem>>, vector<2x128xf32>,
    } else {
    }
    %c0 = arith.constant 0 : index
    %c0_1 = arith.constant 0 : index
    %c0_2 = arith.constant 0 : index
    %c0_3 = arith.constant 0 : index
    %3 = vector.load %arg2[%c0, %c0_1, %c0_2, %c0_3] : memref<1x4x2x128xf32, #tpu.memory_space<vmem>>, vector<1x4x2x128xf32>
    %4 = vector.shape_cast %3 : vector<1x4x2x128xf32> to vector<4x2x128xf32>
    %c0_4 = arith.constant 0 : index
    %c0_5 = arith.constant 0 : index
    %c0_6 = arith.constant 0 : index
    %c0_7 = arith.constant 0 : index
    %5 = vector.load %arg3[%c0_4, %c0_5, %c0_6, %c0_7] : memref<1x1x2x128xi32, #tpu.memory_space<vmem>>, vector<1x1x2x128xi32>
    %6 = vector.shape_cast %5 : vector<1x1x2x128xi32> to vector<2x128xi32>
    %7 = tpu.iota {dimensions = array<i32: 0>} : vector<4x2x128xi32>
    %8 = vector.shape_cast %6 : vector<2x128xi32> to vector<1x2x128xi32>
    %9 = vector.broadcast %8 : vector<1x2x128xi32> to vector<4x2x128xi32>
    %10 = arith.cmpi eq, %7, %9 : vector<4x2x128xi32>
    %11 = arith.extui %10 : vector<4x2x128xi1> to vector<4x2x128xi32>
    %12 = arith.sitofp %11 : vector<4x2x128xi32> to vector<4x2x128xf32>
    %cst = arith.constant dense<0xFF800000> : vector<2x128xf32>
    %13 = vector.multi_reduction <maximumf>, %4, %cst [0] : vector<4x2x128xf32> to vector<2x128xf32>
    %14 = vector.shape_cast %13 : vector<2x128xf32> to vector<1x2x128xf32>
    %15 = vector.broadcast %14 : vector<1x2x128xf32> to vector<4x2x128xf32>
    %16 = arith.subf %4, %15 : vector<4x2x128xf32>
    %17 = math.exp %16 : vector<4x2x128xf32>
    %cst_8 = arith.constant dense<0.000000e+00> : vector<2x128xf32>
    %18 = vector.multi_reduction <add>, %17, %cst_8 [0] : vector<4x2x128xf32> to vector<2x128xf32>
    %19 = arith.mulf %4, %12 : vector<4x2x128xf32>
    %cst_9 = arith.constant dense<0.000000e+00> : vector<2x128xf32>
    %20 = vector.multi_reduction <add>, %19, %cst_9 [0] : vector<4x2x128xf32> to vector<2x128xf32>
    %21 = arith.mulf %17, %12 : vector<4x2x128xf32>
    %cst_10 = arith.constant dense<0.000000e+00> : vector<2x128xf32>
    %22 = vector.multi_reduction <add>, %21, %cst_10 [0] : vector<4x2x128xf32> to vector<2x128xf32>
    %23 = arith.subf %20, %13 : vector<2x128xf32>
    %24 = math.log %18 : vector<2x128xf32>
    %25 = arith.subf %23, %24 : vector<2x128xf32>
    %26 = arith.divf %22, %18 : vector<2x128xf32>
    %cst_11 = arith.constant 0.000000e+00 : f32
    %27 = vector.broadcast %cst_11 : f32 to vector<2x128xf32>
    %c0_i32_12 = arith.constant 0 : i32
    %28 = vector.broadcast %c0_i32_12 : i32 to vector<2x128xi32>
    %29 = arith.cmpi eq, %6, %28 : vector<2x128xi32>
    %30 = arith.extui %29 : vector<2x128xi1> to vector<2x128xi32>
    %31 = arith.sitofp %30 : vector<2x128xi32> to vector<2x128xf32>
    %cst_13 = arith.constant 1.000000e-01 : f32
    %32 = vector.broadcast %cst_13 : f32 to vector<2x128xf32>
    %33 = arith.mulf %32, %31 : vector<2x128xf32>
    %34 = arith.addf %27, %33 : vector<2x128xf32>
    %c1_i32 = arith.constant 1 : i32
    %35 = vector.broadcast %c1_i32 : i32 to vector<2x128xi32>
    %36 = arith.cmpi eq, %6, %35 : vector<2x128xi32>
    %37 = arith.extui %36 : vector<2x128xi1> to vector<2x128xi32>
    %38 = arith.sitofp %37 : vector<2x128xi32> to vector<2x128xf32>
    %cst_14 = arith.constant 2.000000e-01 : f32
    %39 = vector.broadcast %cst_14 : f32 to vector<2x128xf32>
    %40 = arith.mulf %39, %38 : vector<2x128xf32>
    %41 = arith.addf %34, %40 : vector<2x128xf32>
    %c2_i32 = arith.constant 2 : i32
    %42 = vector.broadcast %c2_i32 : i32 to vector<2x128xi32>
    %43 = arith.cmpi eq, %6, %42 : vector<2x128xi32>
    %44 = arith.extui %43 : vector<2x128xi1> to vector<2x128xi32>
    %45 = arith.sitofp %44 : vector<2x128xi32> to vector<2x128xf32>
    %cst_15 = arith.constant 3.000000e-01 : f32
    %46 = vector.broadcast %cst_15 : f32 to vector<2x128xf32>
    %47 = arith.mulf %46, %45 : vector<2x128xf32>
    %48 = arith.addf %41, %47 : vector<2x128xf32>
    %c3_i32 = arith.constant 3 : i32
    %49 = vector.broadcast %c3_i32 : i32 to vector<2x128xi32>
    %50 = arith.cmpi eq, %6, %49 : vector<2x128xi32>
    %51 = arith.extui %50 : vector<2x128xi1> to vector<2x128xi32>
    %52 = arith.sitofp %51 : vector<2x128xi32> to vector<2x128xf32>
    %cst_16 = arith.constant 4.000000e-01 : f32
    %53 = vector.broadcast %cst_16 : f32 to vector<2x128xf32>
    %54 = arith.mulf %53, %52 : vector<2x128xf32>
    %55 = arith.addf %48, %54 : vector<2x128xf32>
    %56 = arith.mulf %25, %55 : vector<2x128xf32>
    %cst_17 = arith.constant 1.000000e+00 : f32
    %57 = vector.broadcast %cst_17 : f32 to vector<2x128xf32>
    %58 = arith.subf %57, %26 : vector<2x128xf32>
    %59 = arith.mulf %58, %58 : vector<2x128xf32>
    %60 = arith.mulf %59, %56 : vector<2x128xf32>
    %cst_18 = arith.constant 0.000000e+00 : f32
    %61 = vector.broadcast %cst_18 : f32 to vector<2x128xf32>
    %62 = arith.subf %61, %60 : vector<2x128xf32>
    %c256_i32 = arith.constant 256 : i32
    %63 = arith.muli %arg1, %c256_i32 : i32
    %64 = tpu.iota {dimensions = array<i32: 0>} : vector<2x128xi32>
    %65 = tpu.iota {dimensions = array<i32: 1>} : vector<2x128xi32>
    %c128_i32 = arith.constant 128 : i32
    %66 = vector.broadcast %c128_i32 : i32 to vector<2x128xi32>
    %67 = arith.muli %64, %66 : vector<2x128xi32>
    %68 = vector.broadcast %63 : i32 to vector<2x128xi32>
    %69 = arith.addi %68, %67 : vector<2x128xi32>
    %70 = arith.addi %69, %65 : vector<2x128xi32>
    %c256_i32_19 = arith.constant 256 : i32
    %71 = vector.broadcast %c256_i32_19 : i32 to vector<2x128xi32>
    %72 = arith.cmpi slt, %70, %71 : vector<2x128xi32>
    %cst_20 = arith.constant 0.000000e+00 : f32
    %73 = vector.broadcast %cst_20 : f32 to vector<2x128xf32>
    %74 = arith.select %72, %62, %73 : vector<2x128xi1>, vector<2x128xf32>
    %c0_21 = arith.constant 0 : index
    %c0_22 = arith.constant 0 : index
    %75 = vector.load %arg5[%c0_21, %c0_22] : memref<2x128xf32, #tpu.memory_space<vmem>>, vector<2x128xf32>
    %76 = arith.addf %75, %74 : vector<2x128xf32>
    %c0_23 = arith.constant 0 : index
    %c0_24 = arith.constant 0 : index
    %77 = vector.load %arg5[%c0_23, %c0_24] : memref<2x128xf32, #tpu.memory_space<vmem>>, vector<2x128xf32>
    tpu.vector_store %arg5[%c0_23, %c0_24], %76 {strides = array<i32>} : memref<2x128xf32, #tpu.memory_space<vmem>>, vector<2x128xf32>,
    %c0_i32_25 = arith.constant 0 : i32
    %78 = arith.cmpi eq, %arg1, %c0_i32_25 : i32
    %79 = arith.extui %78 : i1 to i32
    %c0_i32_26 = arith.constant 0 : i32
    %80 = arith.cmpi ne, %79, %c0_i32_26 : i32
    scf.if %80 {
      %c0_27 = arith.constant 0 : index
      %c0_28 = arith.constant 0 : index
      %81 = vector.load %arg5[%c0_27, %c0_28] : memref<2x128xf32, #tpu.memory_space<vmem>>, vector<2x128xf32>
      %cst_29 = arith.constant dense<0.000000e+00> : vector<128xf32>
      %82 = vector.multi_reduction <add>, %81, %cst_29 [0] : vector<2x128xf32> to vector<128xf32>
      %83 = vector.shape_cast %82 : vector<128xf32> to vector<1x128xf32>
      %c0_30 = arith.constant 0 : index
      %c0_31 = arith.constant 0 : index
      %c0_32 = arith.constant 0 : index
      %84 = vector.load %arg4[%c0_30, %c0_31, %c0_32] : memref<1x1x128xf32, #tpu.memory_space<vmem>>, vector<1x1x128xf32>
      %85 = vector.shape_cast %84 : vector<1x1x128xf32> to vector<1x128xf32>
      %86 = vector.shape_cast %83 : vector<1x128xf32> to vector<1x1x128xf32>
      tpu.vector_store %arg4[%c0_30, %c0_31, %c0_32], %86 {strides = array<i32>} : memref<1x1x128xf32, #tpu.memory_space<vmem>>, vector<1x1x128xf32>,
    } else {
    }
    return
  }
  func.func @transform_0(%arg0: i32, %arg1: i32) -> (i32, i32, i32, i32) {
    %c0_i32 = arith.constant 0 : i32
    %c0_i32_0 = arith.constant 0 : i32
    %c0_i32_1 = arith.constant 0 : i32
    return %arg0, %c0_i32, %arg1, %c0_i32_0 : i32, i32, i32, i32
  }
  func.func @transform_1(%arg0: i32, %arg1: i32) -> (i32, i32, i32, i32) {
    %c0_i32 = arith.constant 0 : i32
    %c0_i32_0 = arith.constant 0 : i32
    %c0_i32_1 = arith.constant 0 : i32
    return %arg0, %c0_i32, %arg1, %c0_i32_0 : i32, i32, i32, i32
  }
  func.func @transform_2(%arg0: i32, %arg1: i32) -> (i32, i32, i32) {
    %c0_i32 = arith.constant 0 : i32
    %c0_i32_0 = arith.constant 0 : i32
    %c0_i32_1 = arith.constant 0 : i32
    return %arg0, %c0_i32, %c0_i32_0 : i32, i32, i32
  }
}

</mosaic_0001>

<bundles_post_ra>
// kernel: tpu_custom_call.1
= control target key start
LH: loop header
LB: loop body
LE: loop exit
PB: predicated region body
PF: predicated region fallthrough
CT: control target
= control target key end

     0   :  { %7 = vsyncpa [#allocation4], 0  ;;  %s897_s0 = inlined_call_operand.hbm [shape: f32[2,4,2,128], index: 0, kind: input, shape index: {}]   ;;  %s898_s1 = inlined_call_operand.hbm [shape: s32[2,1,2,128], index: 1, kind: input, shape index: {}]   ;;  %s899_s2 = inlined_call_operand.hbm [shape: f32[2,1,128], index: 2, kind: output, shape index: {}]  }
   0x1   :  { %9 = vsyncpa [#allocation4 + $0x1], 0 }
   0x2   :  { %10 = vsyncpa [#allocation7], 0 }
   0x3   :  { %12 = vsyncpa [#allocation7 + $0x1], 0 }
   0x4   :  { %13 = vsyncpa [#allocation5], 0 }
   0x5   :  { %15 = vsyncpa [#allocation5 + $0x1], 0  ;;  %s710_s9 = smov 0   ;;  %s712_s10 = smov 0  }
   0x6   :  { %s714_s11 = smov 0   ;;  %s716_s12 = smov 0  }
   0x7   :  { %s718_s13 = smov 0   ;;  %s720_s14 = smov 0  }
   0x8 LB: > { %s445_s15 = sadd.s32 4294967295, %s687_s14   ;;  %s446_s16 = sadd.s32 4294967294, %s687_s14   ;;  %s687_s14 = sphi %s720_s14, %s21_s14   ;;  %s683_s13 = sphi %s718_s13, %s911_s13   ;;  %s679_s12 = sphi %s716_s12, %s910_s12   ;;  %s675_s11 = sphi %s714_s11, %s909_s11   ;;  %s671_s10 = sphi %s712_s10, %s908_s10   ;;  %s667_s9 = sphi %s710_s9, %s907_s9  }
   0x9   : > { %s33_s17 = sadd.s32 1, %s683_s13  ;;  %s42_s18 = sadd.s32 1, %s675_s11 }
   0xa   : > { %p35_p0 = scmp.ge.s32.totalorder %s33_s17, 2  ;;  %p49_p1 = scmp.ne.s32.totalorder %s675_s11, %s671_s10 }
   0xb   : > { %p50_p2 = scmp.eq.s32.totalorder %s687_s14, 0  ;;  %p55_p3 = scmp.ne.s32.totalorder %s671_s10, %s667_s9 }
   0xc   : > { %s913_s17 = smov (%p35_p0, %s33_s17), 0  ;;  %p56_p5 = scmp.eq.s32.totalorder %s445_s15, 0 }
   0xd   : > { %p751_p4 = por %p50_p2, %p49_p1  ;;  %s37_s20 = ssub.s32 %s683_s13, %s913_s17 }
   0xe   : > { %p107_p6 = scmp.eq.s32.totalorder %s445_s15, 1  ;;  %p40_p7 = scmp.eq.s32.totalorder %s37_s20, 0 }
   0xf   : > { %p757_p8 = por %p56_p5, %p55_p3  ;;  %p113_p10 = scmp.eq.s32.totalorder %s446_s16, 1 }
  0x10   : > { %p761_p9 = por %p107_p6, %p49_p1  ;;  %p482_p13 = scmp.lt.s32.totalorder %s687_s14, 2 }
  0x11   : > { %s766_s23 = scalar_select %p40_p7, %s675_s11, %s42_s18  }
  0x12   : > { %p768_p11 = por %p113_p10, %p55_p3  ;;  %s775_s25 = sand.u32 1, %s675_s11  }
  0x13   : > { %s449_s26 = sshll.u32 %s775_s25, 3  ;;  %s464_s27 = sshll.u32 %s683_s13, 7 }
  0x14   : > { %s144_s30 = scalar_lea.hbm %s897_s0, %s464_s27  ;;  %s137_s3 = scalar_lea.vmem [#allocation3], %s449_s26 }
  0x15   : > { %s145_s4 = sshll.u32 %s137_s3, 4  ;;  %p784_p0 = pnand %p482_p13, %p751_p4  ;;  %s146_s4 = int_to_ptr.vmem [resolvable:$true] %s145_s4 }
  0x16   : > { %p454_p1 = scmp.ge.s32.totalorder %s687_s14, 1  ;;  %s134_s6 = scalar_lea.sflag [#allocation4], %s775_s25 }
  0x17   : > { %p549_p2 = pneg %p784_p0  ;;  %s560_s7 = scalar_lea.vmem %s146_s4, 128 }
  0x18   : > { %p561_p3 = scmp.ne.s32.totalorder %s146_s4, %s560_s7  ;;  %s689_s8 = smov [#allocation3]  }
  0x19   : > { %s565_s15 = sshll.u32 %s689_s8, 4  ;;  %s566_s15 = int_to_ptr.vmem [resolvable:$false] %s565_s15 }
  0x1a   : > { %p563_p5 = pnand %p561_p3, %p549_p2  ;;  %s567_s16 = scalar_lea.vmem %s566_s15, 256 }
  0x1b   : > { %p568_p4 = scmp.lt.s32.totalorder %s146_s4, %s566_s15  ;;  %p569_p7 = scmp.lt.s32.totalorder %s567_s16, %s560_s7 }
  0x1c   : > { %p564_p6 = pneg %p563_p5 }
  0x1d   : > { %p570_p10 = por %p569_p7, %p568_p4 }
  0x1f   : > { %p571_p13 = pnand %p570_p10, %p564_p6 }
  0x21   : > { %574 = shalt.err (!%p571_p13)
}
  0x22   : > { %s690_s18 = smov 32   ;;  %s691_s19 = smov 2  }
  0x23   : > { %474 = dma.hbm_to_vmem [thread:$0]  (!%p784_p0), %s144_s30, 128, %s146_s4, %s134_s6, %s690_s18, %s690_s18, %s691_s19  }
  0x24   : > { %p172_p3 = scmp.lt.s32.totalorder %s687_s14, 3  ;;  %s452_s20 = sshll.u32 %s775_s25, 1 }
  0x25   : > { %s453_s26 = sshll.u32 %s683_s13, 5  ;;  %s159_s7 = scalar_lea.vmem [#allocation6], %s452_s20 }
  0x26   : > { %p802_p5 = pnand %p454_p1, %p172_p3  ;;  %s165_s3 = scalar_lea.hbm %s898_s1, %s453_s26 }
  0x27   : > { %s167_s8 = sshll.u32 %s159_s7, 4  ;;  %s156_s15 = scalar_lea.sflag [#allocation7], %s775_s25  ;;  %s168_s8 = int_to_ptr.vmem [resolvable:$true] %s167_s8 }
  0x28   : > { %s588_s16 = scalar_lea.vmem %s168_s8, 32  ;;  %s692_s30 = smov [#allocation6]  }
  0x29   : > { %p589_p6 = scmp.ne.s32.totalorder %s168_s8, %s588_s16  ;;  %s593_s4 = sshll.u32 %s692_s30, 4  ;;  %s594_s4 = int_to_ptr.vmem [resolvable:$false] %s593_s4 }
  0x2a   : > { %s595_s6 = scalar_lea.vmem %s594_s4, 64  ;;  %p596_p1 = scmp.lt.s32.totalorder %s168_s8, %s594_s4 }
  0x2b   : > { %p591_p4 = pnand %p589_p6, %p549_p2  ;;  %p597_p10 = scmp.lt.s32.totalorder %s595_s6, %s588_s16 }
  0x2d   : > { %p592_p7 = pneg %p591_p4  ;;  %p598_p13 = por %p597_p10, %p596_p1 }
  0x2f   : > { %p599_p3 = pnand %p598_p13, %p592_p7 }
  0x31   : > { %602 = shalt.err (!%p599_p3)
}
  0x32   : > { %477 = dma.hbm_to_vmem [thread:$0]  (!%p784_p0), %s165_s3, 32, %s168_s8, %s156_s15  }
  0x33   : > { %176 = sbr.rel (%p802_p5) target bundleno = 156 (0x9c), region = 28  ;;  %s818_s25 = sand.u32 (!%p802_p5), 1, %s671_s10  }
  0x34   : > { %s455_s18 = sshll.u32 (!%p802_p5), %s818_s25, 3  ;;  %s179_s19 = scalar_lea.sflag (!%p802_p5), [#allocation4], %s818_s25 }
  0x35   : > { %s182_s20 = scalar_lea.vmem (!%p802_p5), [#allocation3], %s455_s18 }
  0x38   : > { %654 = dma.done.wait (%p757_p8), %s179_s19, 128  }
  0x39   : > { %656 = vsyncadd (%p757_p8), %s179_s19, 4294967168  ;;  %s456_s5 = sshll.u32 %s818_s25, 1  ;;  %s188_s26 = scalar_lea.sflag [#allocation7], %s818_s25 }
  0x3a   : > { %s191_s27 = scalar_lea.vmem [#allocation6], %s456_s5 }
  0x3b   : > { %658 = dma.done.wait (%p757_p8), %s188_s26, 32  }
  0x3c   : > { %660 = vsyncadd (%p757_p8), %s188_s26, 4294967264  ;;  %v693_v0 = vmov 0.0   ;;  %vm238_vm0 = vcmask 1041408   ;;  %v221_v1 = vld [vmem:[%s182_s20] sm:$0x3]  ;;  %v307_v58 = vlaneseq  ;;  %s215_s21 = scalar_lea.vmem [#allocation8], %s818_s25 }
  0x3d   : > { %220 = vst [vmem:[#allocation2] sm:$0x3] %v693_v0  ;;  %v222_v2 = vld [vmem:[%s182_s20 + $0x2] sm:$0x3]  ;;  %v223_v3 = vld [vmem:[%s182_s20 + $0x4] sm:$0x3] }
  0x3e   : > { %v224_v4 = vld [vmem:[%s182_s20 + $0x6] sm:$0x3]  ;;  %v239_v5 = vsel %vm238_vm0, %v221_v1, -inf  ;;  %v240_v6 = vsel %vm238_vm0, %v222_v2, -inf  ;;  %v241_v7 = vsel %vm238_vm0, %v223_v3, -inf  ;;  %s345_s28 = sshll.u32 %s215_s21, 4  ;;  %s346_s28 = int_to_ptr.vmem [resolvable:$true] %s345_s28 }
  0x3f   : > { %v242_v8 = vsel %vm238_vm0, %v224_v4, -inf  ;;  %v243_v9 = vmax.f32 %v239_v5, %v240_v6  ;;  %v225_v20 = vld [vmem:[%s191_s27] sm:$0x3]  ;;  %s461_s29 = sshll.u32 %s679_s12, 4  ;;  %s333_s15 = scalar_lea.sflag [#allocation5], %s818_s25 }
  0x40   : > { %v244_v10 = vmax.f32 %v241_v7, %v242_v8  ;;  %vm226_vm1 = vcmp.eq.s32.totalorder %v225_v20, 0  ;;  %vm227_vm2 = vcmp.eq.s32.totalorder %v225_v20, 1  ;;  %vm228_vm3 = vcmp.eq.s32.totalorder %v225_v20, 2  ;;  %s343_s8 = scalar_lea.hbm %s899_s2, %s461_s29  ;;  %s603_s16 = scalar_lea.vmem %s346_s28, 16 }
  0x41   : > { %v457_v21 = vsel %vm226_vm1, 1.0, %v693_v0  ;;  %v458_v22 = vsel %vm227_vm2, 1.0, %v693_v0  ;;  %v459_v31 = vsel %vm228_vm3, 1.0, %v693_v0  ;;  %vm229_vm4 = vcmp.eq.s32.totalorder %v225_v20, 3  ;;  %p604_p8 = scmp.ne.s32.totalorder %s346_s28, %s603_s16  ;;  %s694_s30 = smov [#allocation8]  }
  0x42   : > { %v836_v11 = vmax.f32 %v243_v9, %v244_v10  ;;  %v265_v24 = vmul.f32 %v457_v21, %v221_v1  ;;  %v266_v26 = vmul.f32 %v458_v22, %v222_v2  ;;  %v267_v40 = vmul.f32 %v459_v31, %v223_v3  ;;  %s607_s4 = sshll.u32 %s694_s30, 4  ;;  %s608_s4 = int_to_ptr.vmem [resolvable:$false] %s607_s4 }
  0x43   : > { %v460_v41 = vsel %vm229_vm4, 1.0, %v693_v0  ;;  %v293_v49 = vmul.f32 0.1, %v457_v21  ;;  %v295_v50 = vmul.f32 0.2, %v458_v22  ;;  %v308_v0 = vshrl.u32 %v307_v58, 7  ;;  %p605_p0 = pnand %p604_p8, %p761_p9  ;;  %p610_p5 = scmp.lt.s32.totalorder %s346_s28, %s608_s4 }
  0x44   : > { %v246_v12 = vsub.f32 %v221_v1, %v836_v11  ;;  %v247_v13 = vsub.f32 %v222_v2, %v836_v11  ;;  %v248_v14 = vsub.f32 %v223_v3, %v836_v11  ;;  %v249_v15 = vsub.f32 %v224_v4, %v836_v11  ;;  %s609_s6 = scalar_lea.vmem %s608_s4, 32 }
  0x45   : > { %v269_v34 = vsel %vm238_vm0, %v265_v24, 0.0  ;;  %v270_v36 = vsel %vm238_vm0, %v266_v26, 0.0  ;;  %v268_v47 = vmul.f32 %v460_v41, %v224_v4  ;;  %v272_v48 = vsel %vm238_vm0, %v267_v40, 0.0  ;;  %p606_p2 = pneg %p605_p0  ;;  %p611_p6 = scmp.lt.s32.totalorder %s609_s6, %s603_s16 }
  0x46   : > { %v250_v16 = vmul.f32 1.442695, %v246_v12  ;;  %v252_v17 = vmul.f32 1.442695, %v247_v13  ;;  %v254_v18 = vmul.f32 1.442695, %v248_v14  ;;  %v271_v43 = vadd.f32 %v270_v36, %v269_v34 }
  0x47   : > { %v256_v19 = vmul.f32 1.442695, %v249_v15  ;;  %v274_v55 = vsel %vm238_vm0, %v268_v47, 0.0  ;;  %v297_v56 = vmul.f32 0.3, %v459_v31  ;;  %v296_v57 = vadd.f32 %v295_v50, %v293_v49  ;;  %p612_p4 = por %p611_p6, %p610_p5 }
  0x48   : > { %535 = vpow2.f32 %v250_v16  ;;  %v273_v52 = vadd.f32 %v272_v48, %v271_v43  ;;  %v299_v63 = vmul.f32 0.4, %v460_v41  ;;  %v310_v7 = vand.u32 127, %v307_v58 }
  0x49   : > { %537 = vpow2.f32 %v252_v17  ;;  %v298_v62 = vadd.f32 %v297_v56, %v296_v57  ;;  %v311_v8 = vmul.u32 128, %v308_v0  ;;  %p613_p7 = pnand %p612_p4, %p606_p2 }
  0x4a   : > { %539 = vpow2.f32 %v254_v18  ;;  %v275_v60 = vadd.f32 %v274_v55, %v273_v52  ;;  %v317_v18 = vld [vmem:[#allocation2] sm:$0x3] }
  0x4b   : > { %541 = vpow2.f32 %v256_v19  ;;  %v300_v6 = vadd.f32 %v299_v63, %v298_v62  ;;  %v314_v14 = vadd.s32 %v311_v8, %v310_v7 }
  0x4c   : > { %v287_v2 = vsub.f32 %v275_v60, %v836_v11 }
  0x4d   : > { %vm315_vm5 = vcmp.lt.s32.totalorder %v314_v14, 256 }
  0x55   : > { %v536_v23 = vpop.eup %535 }
  0x56   : > { %v538_v25 = vpop.eup %537  ;;  %v258_v27 = vsel %vm238_vm0, %v536_v23, 0.0  ;;  %v276_v37 = vmul.f32 %v536_v23, %v457_v21 }
  0x57   : > { %v540_v28 = vpop.eup %539  ;;  %v259_v29 = vsel %vm238_vm0, %v538_v25, 0.0  ;;  %v277_v38 = vmul.f32 %v538_v25, %v458_v22 }
  0x58   : > { %v542_v30 = vpop.eup %541  ;;  %v260_v32 = vadd.f32 %v259_v29, %v258_v27  ;;  %v261_v33 = vsel %vm238_vm0, %v540_v28, 0.0  ;;  %v278_v44 = vmul.f32 %v540_v28, %v459_v31  ;;  %v280_v45 = vsel %vm238_vm0, %v276_v37, 0.0 }
  0x59   : > { %v263_v35 = vsel %vm238_vm0, %v542_v30, 0.0  ;;  %v281_v46 = vsel %vm238_vm0, %v277_v38, 0.0  ;;  %v279_v53 = vmul.f32 %v542_v30, %v460_v41 }
  0x5a   : > { %v262_v39 = vadd.f32 %v261_v33, %v260_v32  ;;  %v282_v51 = vadd.f32 %v281_v46, %v280_v45  ;;  %v283_v54 = vsel %vm238_vm0, %v278_v44, 0.0 }
  0x5b   : > { %v285_v61 = vsel %vm238_vm0, %v279_v53, 0.0 }
  0x5c   : > { %v264_v42 = vadd.f32 %v263_v35, %v262_v39  ;;  %v284_v59 = vadd.f32 %v283_v54, %v282_v51 }
  0x5e   : > { %543 = vlog2.f32 %v264_v42  ;;  %v286_v1 = vadd.f32 %v285_v61, %v284_v59 }
  0x5f   : > { %545 = vrcp.f32 %v264_v42 }
  0x6b   : > { %v544_v3 = vpop.eup %543 }
  0x6c   : > { %v546_v4 = vpop.eup %545  ;;  %v289_v5 = vmul.f32 0.6931472, %v544_v3 }
  0x6d   : > { %v292_v9 = vmul.f32 %v546_v4, %v286_v1 }
  0x6e   : > { %v290_v10 = vsub.f32 %v287_v2, %v289_v5 }
  0x6f   : > { %v302_v12 = vsub.f32 1.0, %v292_v9 }
  0x70   : > { %v301_v13 = vmul.f32 %v300_v6, %v290_v10 }
  0x71   : > { %v303_v15 = vmul.f32 %v302_v12, %v302_v12 }
  0x73   : > { %v304_v16 = vmul.f32 %v303_v15, %v301_v13 }
  0x75   : > { %v305_v17 = vsub.f32 0.0, %v304_v16 }
  0x77   : > { %v316_v19 = vsel %vm315_vm5, %v305_v17, 0.0 }
  0x78   : > { %v318_v11 = vadd.f32 %v317_v18, %v316_v19 }
  0x7a   : > { %319 = vst [vmem:[#allocation2] sm:$0x3] %v318_v11 }
  0x81   : > { %v323_v20 = vld [vmem:[#allocation2] sm:$0x3] }
  0x82   : > { %v324_v21 = vsel %vm238_vm0, %v323_v20, 0.0 }
  0x83   : > { %v325_v22 = vrot.slane %v324_v21, 4 }
  0x85   : > { %v326_v23 = vadd.f32 %v325_v22, %v324_v21 }
  0x87   : > { %v327_v24 = vrot.slane %v326_v23, 2 }
  0x89   : > { %v328_v25 = vadd.f32 %v327_v24, %v326_v23 }
  0x8b   : > { %v329_v26 = vrot.slane %v328_v25, 1 }
  0x8d   : > { %v330_v27 = vadd.f32 %v329_v26, %v328_v25 }
  0x8f   : > { %331 = vst [vmem:[%s215_s21] sm:$0x1] %v330_v27 }
  0x90   : > { %616 = shalt.err (!%p613_p7)
}
  0x91   : > { %s617_s12 = scalar_lea.hbm %s343_s8, 16  ;;  %s621_s19 = scalar_lea.hbm %s899_s2, 32 }
  0x92   : > { %p618_p1 = scmp.ne.s32.totalorder %s343_s8, %s617_s12  ;;  %p622_p3 = scmp.lt.s32.totalorder %s343_s8, %s899_s2 }
  0x93   : > { %p623_p8 = scmp.lt.s32.totalorder %s621_s19, %s617_s12 }
  0x94   : > { %p619_p10 = pnand %p618_p1, %p761_p9 }
  0x95   : > { %p624_p0 = por %p623_p8, %p622_p3 }
  0x96   : > { %p620_p13 = pneg %p619_p10 }
  0x98   : > { %p625_p12 = pnand %p624_p0, %p620_p13 }
  0x9a   : > { %628 = shalt.err (!%p625_p12)
}
  0x9b   : > { %469 = dma.vmem_to_hbm [thread:$0]  (%p761_p9), %s346_s28, 16, %s343_s8, %s333_s15  }
  0x9c PF: > { %s357_s26 = sand.u32 1, %s667_s9   ;;  %p906_p2 = scmp.ge.s32.totalorder %s687_s14, 2 }
  0x9d   : > { %s358_s27 = scalar_lea.sflag [#allocation5], %s357_s26 }
  0x9e   : > { %p479_p5 = pnand %p906_p2, %p768_p11 }
  0xa0   : > { %p480_p6 = pneg %p479_p5 }
  0xa2   : > { %662 = dma.done.wait (%p480_p6), %s358_s27, 16  }
  0xa3   : > { %664 = vsyncadd (%p480_p6), %s358_s27, 4294967280  ;;  %s21_s14 = sadd.s32 1, %s687_s14   ;;  %s907_s9 = smov %s671_s10 }
  0xa4   : > { %p18_p4 = scmp.ge.s32.totalorder %s21_s14, 4   ;;  %s908_s10 = smov %s675_s11 }
  0xa5   : > { %s909_s11 = smov %s766_s23  ;;  %s910_s12 = smov %s683_s13 }
  0xa6   : > { %s911_s13 = smov %s913_s17  ;;  %20 = sbr.rel (!%p18_p4) target bundleno = 8 (0x8), region = 94 }
  0xab   :  { %362 = vsyncpa [#allocation4], 1 }
  0xac   :  { %364 = vsyncpa [#allocation4 + $0x1], 1 }
  0xad   :  { %365 = vsyncpa [#allocation7], 1 }
  0xae   :  { %367 = vsyncpa [#allocation7 + $0x1], 1 }
  0xaf   :  { %368 = vsyncpa [#allocation5], 1 }
  0xb0   :  { %370 = vsyncpa [#allocation5 + $0x1], 1 }

</bundles_post_ra>
